<compile_context>
chip_gen: v5e
topology: v5e:2x2
jax: 0.10.0
libtpu: 0.0.40
codegen_flags: <defaults>
</compile_context>

<pallas_src>
import functools

import jax
import jax.numpy as jnp
from jax.experimental import pallas as pl
from jax.experimental.pallas import tpu as pltpu

LANE = 128
SUBLANE = 8


def _round_up(v, m):
    return (v + m - 1) // m * m


# ----------------------------------------------------------------------------
# Fused Pallas kernel: 3 branches x E-tiles -> accumulate -> bias + BatchNorm
# ----------------------------------------------------------------------------
def _fused_compgcn_kernel(tails_ref, rels_ref, w_ref, row_ref, norm_ref,
                          affine_ref, o_ref, acc_ref, *, opn, n_valid):
    """One grid step = one (branch, edge-tile) pair.

    tails_ref  : [e_tile, Din_pad]   gathered tail embeddings x[col]
    rels_ref   : [e_tile, Din_pad]   gathered relation embeddings rel[type]
    w_ref      : [Din_pad, Dout_pad] weight_{in,out,loop} for this branch
    row_ref    : [1, e_tile] int32   destination row per edge (-1 for padding)
    norm_ref   : [1, e_tile] f32     row-normalisation per edge (0 for padding)
    affine_ref : [8, Dout_pad]       rows 0/1/2 = bias / bn_gamma / bn_beta
    o_ref      : [N_pad, Dout_pad]   final output (written on last step only)
    acc_ref    : [N_pad, Dout_pad]   f32 VMEM accumulator (scratch)
    """
    b = pl.program_id(0)
    e = pl.program_id(1)

    @pl.when(jnp.logical_and(b == 0, e == 0))
    def _init():
        acc_ref[...] = jnp.zeros_like(acc_ref)

    # --- composition (VPU) --------------------------------------------------
    if opn == "mult":
        trans = tails_ref[...] * rels_ref[...]
    elif opn == "sub":
        trans = tails_ref[...] - rels_ref[...]
    else:
        raise NotImplementedError(opn)

    # --- edge transform (MXU #1): [e_tile, Din] @ [Din, Dout] ---------------
    msg = jnp.dot(trans, w_ref[...], preferred_element_type=jnp.float32)

    # --- on-chip weighted scatter + scatter-add (MXU #2) --------------------
    # scat[n, t] = norm[t] if row[t] == n else 0  (norm folds edge weighting;
    # padded edges carry row = -1, norm = 0 and thus contribute nothing).
    n_pad = acc_ref.shape[0]
    e_tile = msg.shape[0]
    node_iota = jax.lax.broadcasted_iota(jnp.int32, (n_pad, e_tile), 0)
    scat = jnp.where(node_iota == row_ref[...], norm_ref[...], 0.0)
    acc_ref[...] += jnp.dot(scat, msg, preferred_element_type=jnp.float32)

    # --- finalize on the very last grid step --------------------------------
    @pl.when(jnp.logical_and(b == pl.num_programs(0) - 1,
                             e == pl.num_programs(1) - 1))
    def _finalize():
        aff = affine_ref[...]
        bias, gamma, beta = aff[0:1, :], aff[1:2, :], aff[2:3, :]
        out = acc_ref[...] * (1.0 / 3.0) + bias
        # training-mode BatchNorm1d with batch statistics over the N valid
        # rows (padded rows are masked out of mean/var).
        row_ids = jax.lax.broadcasted_iota(jnp.int32, out.shape, 0)
        valid = (row_ids < n_valid).astype(jnp.float32)
        inv_n = 1.0 / float(n_valid)
        mean = jnp.sum(out * valid, axis=0, keepdims=True) * inv_n
        diff = (out - mean) * valid
        var = jnp.sum(diff * diff, axis=0, keepdims=True) * inv_n
        normed = (out - mean) * jax.lax.rsqrt(var + 1e-5)
        o_ref[...] = (normed * gamma + beta).astype(o_ref.dtype)


def pallas_compgcn_fused(tails, rels, weights, rows, norms, affine, *,
                         n_valid, n_pad, dout_pad, e_tile, opn):
    three, e_pad, din_pad = tails.shape
    grid = (three, e_pad // e_tile)
    kernel = functools.partial(_fused_compgcn_kernel, opn=opn, n_valid=n_valid)
    return pl.pallas_call(
        kernel,
        out_shape=jax.ShapeDtypeStruct((n_pad, dout_pad), jnp.float32),
        grid_spec=pltpu.PrefetchScalarGridSpec(
            num_scalar_prefetch=0,
            grid=grid,
            in_specs=[
                pl.BlockSpec((None, e_tile, din_pad), lambda b, e: (b, e, 0)),
                pl.BlockSpec((None, e_tile, din_pad), lambda b, e: (b, e, 0)),
                pl.BlockSpec((None, din_pad, dout_pad), lambda b, e: (b, 0, 0)),
                pl.BlockSpec((None, 1, e_tile), lambda b, e: (b, 0, e)),
                pl.BlockSpec((None, 1, e_tile), lambda b, e: (b, 0, e)),
                pl.BlockSpec((SUBLANE, dout_pad), lambda b, e: (0, 0)),
            ],
            out_specs=pl.BlockSpec((n_pad, dout_pad), lambda b, e: (0, 0)),
            scratch_shapes=[pltpu.VMEM((n_pad, dout_pad), jnp.float32)],
        ),
        compiler_params=pltpu.CompilerParams(
            # branch axis and edge axis both accumulate into acc_ref.
            dimension_semantics=("arbitrary", "arbitrary")),
    )(tails, rels, weights, rows, norms, affine)


# ----------------------------------------------------------------------------
# CompGCNLayer forward (glue in plain JAX, hot path in the fused kernel)
# ----------------------------------------------------------------------------
def row_normalization(num_nodes, row):
    # cogdl.utils.row_normalization: 1/deg(row) per edge, inf -> 0
    deg = jnp.zeros((num_nodes,), jnp.float32).at[row].add(1.0)
    inv = jnp.where(deg > 0, 1.0 / deg, 0.0)
    return inv[row]


def compgcn_forward(params, x, rel_embed, edge_index, edge_type, opn="mult",
                    compute_dtype=jnp.float32):
    # compute_dtype=jnp.bfloat16 halves the DMA bytes of the gathered edge
    # tensors / weights and uses the MXU bf16 path; f32 keeps an exact match
    # with the f32 reference used below.
    N, Din = x.shape
    Dout = params["weight_in"].shape[1]
    rel_cat = jnp.concatenate([rel_embed, params["loop_rel"]], axis=0)
    R1 = rel_cat.shape[0]  # 2*num_rels + 1

    num_edges = edge_index.shape[1] // 2
    row = edge_index[0].astype(jnp.int32)
    col = edge_index[1].astype(jnp.int32)
    etype = edge_type.astype(jnp.int32)
    i_row, i_col, i_typ = row[:num_edges], col[:num_edges], etype[:num_edges]
    r_row, r_col, r_typ = row[num_edges:], col[num_edges:], etype[num_edges:]
    l_idx = jnp.arange(N, dtype=jnp.int32)
    l_typ = jnp.full((N,), R1 - 1, dtype=jnp.int32)

    in_norm = row_normalization(N, i_row)
    rev_norm = row_normalization(N, r_row)
    loop_norm = jnp.ones((N,), jnp.float32)

    # -- padded geometry: lane-dense features, 128-wide edge tiles -----------
    n_pad = _round_up(N, SUBLANE)
    din_pad = _round_up(Din, LANE)
    dout_pad = _round_up(Dout, LANE)
    max_e = max(num_edges, N)                      # edges per branch
    e_tile = min(512, _round_up(max_e, LANE))
    e_pad = _round_up(max_e, e_tile)
    # TODO(synk): for large graphs also tile the node axis ('parallel') with a
    # two-pass BatchNorm and size e_tile per-generation VMEM budget.

    def pad_branch(r, c, t, w):
        pad = e_pad - r.shape[0]
        return (jnp.pad(r, (0, pad), constant_values=-1),
                jnp.pad(c, (0, pad), constant_values=0),
                jnp.pad(t, (0, pad), constant_values=0),
                jnp.pad(w, (0, pad), constant_values=0.0))

    br = [pad_branch(i_row, i_col, i_typ, in_norm),
          pad_branch(r_row, r_col, r_typ, rev_norm),
          pad_branch(l_idx, l_idx, l_typ, loop_norm)]
    rows_all = jnp.stack([b[0] for b in br])[:, None, :]    # [3,1,e_pad] i32
    cols_all = jnp.stack([b[1] for b in br])                 # [3,e_pad]
    typs_all = jnp.stack([b[2] for b in br])                 # [3,e_pad]
    norms_all = jnp.stack([b[3] for b in br])[:, None, :]    # [3,1,e_pad] f32

    # wrapper-side gathers of tail / relation embeddings.
    # TODO(synk): pull these gathers into the kernel pipeline (scalar-prefetched
    # indices + manual DMA gather from HBM refs) to avoid the [3,e_pad,Din]
    # HBM round trip.
    x_pad = jnp.pad(x, ((0, 0), (0, din_pad - Din))).astype(compute_dtype)
    rel_pad = jnp.pad(rel_cat, ((0, 0), (0, din_pad - Din))).astype(compute_dtype)
    tails = x_pad[cols_all]                                  # [3,e_pad,din_pad]
    rels = rel_pad[typs_all]                                 # [3,e_pad,din_pad]

    weights = jnp.stack([params["weight_in"], params["weight_out"],
                         params["weight_loop"]])
    weights = jnp.pad(weights, ((0, 0), (0, din_pad - Din),
                                (0, dout_pad - Dout))).astype(compute_dtype)

    affine = jnp.zeros((SUBLANE, dout_pad), jnp.float32)
    affine = affine.at[0, :Dout].set(params["bias"])
    affine = affine.at[1, :Dout].set(params["bn_gamma"])
    affine = affine.at[2, :Dout].set(params["bn_beta"])

    out_pad = pallas_compgcn_fused(
        tails, rels, weights, rows_all, norms_all, affine,
        n_valid=N, n_pad=n_pad, dout_pad=dout_pad, e_tile=e_tile, opn=opn)

    out = out_pad[:N, :Dout]
    # activation = identity, dropout p = 0.0
    # tiny [2R+1,Din] @ [Din,Dout] matmul: leave to XLA (a dedicated
    # pallas_call is pure launch overhead at this size).
    rel_out = (rel_cat @ params["weight_rel"])[:-1]
    return out, rel_out


# ----------------------------------------------------------------------------
# Pure-JAX reference (mirrors the torch code) for verification
# ----------------------------------------------------------------------------
def reference_forward(params, x, rel_embed, edge_index, edge_type, opn="mult"):
    N = x.shape[0]
    rel_cat = jnp.concatenate([rel_embed, params["loop_rel"]], axis=0)
    R1 = rel_cat.shape[0]
    num_edges = edge_index.shape[1] // 2
    row, col = edge_index[0], edge_index[1]

    def mp(r, c, t, w, ew):
        trans = x[c] * rel_cat[t] if opn == "mult" else x[c] - rel_cat[t]
        trans = trans @ w
        if ew is not None:
            trans = trans * ew[:, None]
        return jnp.zeros((N, w.shape[1]), jnp.float32).at[r].add(trans)

    i_row, i_col = row[:num_edges], col[:num_edges]
    rev_row, rev_col = row[num_edges:], col[num_edges:]
    emb = mp(i_row, i_col, edge_type[:num_edges], params["weight_in"],
             row_normalization(N, i_row))
    rev = mp(rev_row, rev_col, edge_type[num_edges:], params["weight_out"],
             row_normalization(N, rev_row))
    loop = mp(jnp.arange(N), jnp.arange(N),
              jnp.full((N,), R1 - 1, jnp.int32), params["weight_loop"], None)
    out = (emb + rev + loop) / 3.0 + params["bias"]
    mean = out.mean(0, keepdims=True)
    var = ((out - mean) ** 2).mean(0, keepdims=True)
    out = (out - mean) / jnp.sqrt(var + 1e-5)
    out = out * params["bn_gamma"] + params["bn_beta"]
    return out, (rel_cat @ params["weight_rel"])[:-1]


# ----------------------------------------------------------------------------
# main
# ----------------------------------------------------------------------------
def xavier_normal(key, fan_in, fan_out):
    std = (2.0 / (fan_in + fan_out)) ** 0.5
    return std * jax.random.normal(key, (fan_in, fan_out), jnp.float32)


if __name__ == "__main__":
    key = jax.random.PRNGKey(0)
    N, Din, Dout, num_rels, E = 16, 32, 32, 4, 24

    ks = jax.random.split(key, 12)
    params = {
        "weight_in":   xavier_normal(ks[0], Din, Dout),
        "weight_out":  xavier_normal(ks[1], Din, Dout),
        "weight_rel":  xavier_normal(ks[2], Din, Dout),
        "weight_loop": xavier_normal(ks[3], Din, Dout),
        "loop_rel":    xavier_normal(ks[4], 1, Din),
        "bias":        jnp.zeros((Dout,), jnp.float32),
        "bn_gamma":    jnp.ones((Dout,), jnp.float32),
        "bn_beta":     jnp.zeros((Dout,), jnp.float32),
    }
    # TODO(synk): num_bases branch (BasesRelEmbLayer) is just alpha @ weight;
    # it is unused here (num_bases=None) and would be left to XLA anyway.

    x = jax.random.normal(ks[5], (N, Din), jnp.float32)
    rel_embed = jax.random.normal(ks[6], (2 * num_rels, Din), jnp.float32)

    fwd_row = jax.random.randint(ks[7], (E,), 0, N, jnp.int32)
    fwd_col = jax.random.randint(ks[8], (E,), 0, N, jnp.int32)
    fwd_typ = jax.random.randint(ks[9], (E,), 0, num_rels, jnp.int32)
    edge_index = jnp.stack([jnp.concatenate([fwd_row, fwd_col]),
                            jnp.concatenate([fwd_col, fwd_row])])
    edge_type = jnp.concatenate([fwd_typ, fwd_typ + num_rels])

    out, rel_out = compgcn_forward(params, x, rel_embed, edge_index, edge_type)
    out = jax.block_until_ready(out)
    rel_out = jax.block_until_ready(rel_out)

    ref_out, ref_rel = reference_forward(params, x, rel_embed, edge_index,
                                         edge_type)
    assert out.shape == (N, Dout) and rel_out.shape == (2 * num_rels, Dout)
    assert jnp.allclose(out, ref_out, rtol=1e-4, atol=1e-4)
    assert jnp.allclose(rel_out, ref_rel, rtol=1e-4, atol=1e-4)
    print("KERNEL_OK")
</pallas_src>

<mosaic_0001>
module attributes {stable_mosaic.version = 11 : i64} {
  func.func @_fused_compgcn_kernel(%arg0: i32, %arg1: i32, %arg2: memref<1x128x128xf32, #tpu.memory_space<vmem>>, %arg3: memref<1x128x128xf32, #tpu.memory_space<vmem>>, %arg4: memref<1x128x128xf32, #tpu.memory_space<vmem>>, %arg5: memref<1x1x128xi32, #tpu.memory_space<vmem>>, %arg6: memref<1x1x128xf32, #tpu.memory_space<vmem>>, %arg7: memref<8x128xf32, #tpu.memory_space<vmem>>, %arg8: memref<16x128xf32, #tpu.memory_space<vmem>>, %arg9: memref<16x128xf32, #tpu.memory_space<vmem>>) attributes {dimension_semantics = [#tpu.dimension_semantics<arbitrary>, #tpu.dimension_semantics<arbitrary>], iteration_bounds = array<i64: 3, 1>, scalar_prefetch = 0 : i64, scratch_operands = 1 : i64, tpu.core_type = #tpu.core_type<tc>, window_params = [{transform_indices = @transform_0, window_bounds = array<i64: 1, 128, 128>}, {transform_indices = @transform_1, window_bounds = array<i64: 1, 128, 128>}, {transform_indices = @transform_2, window_bounds = array<i64: 1, 128, 128>}, {transform_indices = @transform_3, window_bounds = array<i64: 1, 1, 128>}, {transform_indices = @transform_4, window_bounds = array<i64: 1, 1, 128>}, {pipeline_mode = #tpu.pipeline_mode<synchronous>, transform_indices = @transform_5, window_bounds = array<i64: 8, 128>}, {pipeline_mode = #tpu.pipeline_mode<synchronous>, transform_indices = @transform_6, window_bounds = array<i64: 16, 128>}]} {
    %c0_i32 = arith.constant 0 : i32
    %0 = arith.cmpi eq, %arg0, %c0_i32 : i32
    %c0_i32_0 = arith.constant 0 : i32
    %1 = arith.cmpi eq, %arg1, %c0_i32_0 : i32
    %2 = arith.andi %0, %1 : i1
    %3 = arith.extui %2 : i1 to i32
    %c0_i32_1 = arith.constant 0 : i32
    %4 = arith.cmpi ne, %3, %c0_i32_1 : i32
    scf.if %4 {
      %cst_24 = arith.constant 0.000000e+00 : f32
      %33 = vector.broadcast %cst_24 : f32 to vector<16x128xf32>
      %c0_25 = arith.constant 0 : index
      %c0_26 = arith.constant 0 : index
      %34 = vector.load %arg9[%c0_25, %c0_26] : memref<16x128xf32, #tpu.memory_space<vmem>>, vector<16x128xf32>
      tpu.vector_store %arg9[%c0_25, %c0_26], %33 {strides = array<i32>} : memref<16x128xf32, #tpu.memory_space<vmem>>, vector<16x128xf32>,
    } else {
    }
    %c0 = arith.constant 0 : index
    %c0_2 = arith.constant 0 : index
    %c0_3 = arith.constant 0 : index
    %5 = vector.load %arg2[%c0, %c0_2, %c0_3] : memref<1x128x128xf32, #tpu.memory_space<vmem>>, vector<1x128x128xf32>
    %6 = vector.shape_cast %5 : vector<1x128x128xf32> to vector<128x128xf32>
    %c0_4 = arith.constant 0 : index
    %c0_5 = arith.constant 0 : index
    %c0_6 = arith.constant 0 : index
    %7 = vector.load %arg3[%c0_4, %c0_5, %c0_6] : memref<1x128x128xf32, #tpu.memory_space<vmem>>, vector<1x128x128xf32>
    %8 = vector.shape_cast %7 : vector<1x128x128xf32> to vector<128x128xf32>
    %9 = arith.mulf %6, %8 : vector<128x128xf32>
    %c0_7 = arith.constant 0 : index
    %c0_8 = arith.constant 0 : index
    %c0_9 = arith.constant 0 : index
    %10 = vector.load %arg4[%c0_7, %c0_8, %c0_9] : memref<1x128x128xf32, #tpu.memory_space<vmem>>, vector<1x128x128xf32>
    %11 = vector.shape_cast %10 : vector<1x128x128xf32> to vector<128x128xf32>
    %cst = arith.constant dense<0.000000e+00> : vector<128x128xf32>
    %12 = tpu.matmul %9, %11, %cst {dimension_numbers = #tpu.dot_dimension_numbers<[1], [0], [0], [1], [0, 0, 1, 1], [], []>} : vector<128x128xf32>, vector<128x128xf32>, vector<128x128xf32> -> vector<128x128xf32>
    %13 = tpu.iota {dimensions = array<i32: 0>} : vector<16x128xi32>
    %c0_10 = arith.constant 0 : index
    %c0_11 = arith.constant 0 : index
    %c0_12 = arith.constant 0 : index
    %14 = vector.load %arg5[%c0_10, %c0_11, %c0_12] : memref<1x1x128xi32, #tpu.memory_space<vmem>>, vector<1x1x128xi32>
    %15 = vector.shape_cast %14 : vector<1x1x128xi32> to vector<1x128xi32>
    %16 = vector.broadcast %15 : vector<1x128xi32> to vector<16x128xi32>
    %17 = arith.cmpi eq, %13, %16 : vector<16x128xi32>
    %c0_13 = arith.constant 0 : index
    %c0_14 = arith.constant 0 : index
    %c0_15 = arith.constant 0 : index
    %18 = vector.load %arg6[%c0_13, %c0_14, %c0_15] : memref<1x1x128xf32, #tpu.memory_space<vmem>>, vector<1x1x128xf32>
    %19 = vector.shape_cast %18 : vector<1x1x128xf32> to vector<1x128xf32>
    %cst_16 = arith.constant 0.000000e+00 : f32
    %20 = vector.shape_cast %19 : vector<1x128xf32> to vector<1x128xf32>
    %21 = vector.broadcast %20 : vector<1x128xf32> to vector<16x128xf32>
    %22 = vector.broadcast %cst_16 : f32 to vector<16x128xf32>
    %23 = arith.select %17, %21, %22 : vector<16x128xi1>, vector<16x128xf32>
    %c0_17 = arith.constant 0 : index
    %c0_18 = arith.constant 0 : index
    %24 = vector.load %arg9[%c0_17, %c0_18] : memref<16x128xf32, #tpu.memory_space<vmem>>, vector<16x128xf32>
    %cst_19 = arith.constant dense<0.000000e+00> : vector<16x128xf32>
    %25 = tpu.matmul %23, %12, %cst_19 {dimension_numbers = #tpu.dot_dimension_numbers<[1], [0], [0], [1], [0, 0, 1, 1], [], []>} : vector<16x128xf32>, vector<128x128xf32>, vector<16x128xf32> -> vector<16x128xf32>
    %26 = arith.addf %24, %25 : vector<16x128xf32>
    %c0_20 = arith.constant 0 : index
    %c0_21 = arith.constant 0 : index
    %27 = vector.load %arg9[%c0_20, %c0_21] : memref<16x128xf32, #tpu.memory_space<vmem>>, vector<16x128xf32>
    tpu.vector_store %arg9[%c0_20, %c0_21], %26 {strides = array<i32>} : memref<16x128xf32, #tpu.memory_space<vmem>>, vector<16x128xf32>,
    %c2_i32 = arith.constant 2 : i32
    %28 = arith.cmpi eq, %arg0, %c2_i32 : i32
    %c0_i32_22 = arith.constant 0 : i32
    %29 = arith.cmpi eq, %arg1, %c0_i32_22 : i32
    %30 = arith.andi %28, %29 : i1
    %31 = arith.extui %30 : i1 to i32
    %c0_i32_23 = arith.constant 0 : i32
    %32 = arith.cmpi ne, %31, %c0_i32_23 : i32
    scf.if %32 {
      %c0_24 = arith.constant 0 : index
      %c0_25 = arith.constant 0 : index
      %33 = vector.load %arg7[%c0_24, %c0_25] : memref<8x128xf32, #tpu.memory_space<vmem>>, vector<8x128xf32>
      %34 = vector.extract_strided_slice %33 {offsets = [0, 0], sizes = [1, 128], strides = [1, 1]} : vector<8x128xf32> to vector<1x128xf32>
      %35 = vector.extract_strided_slice %33 {offsets = [1, 0], sizes = [1, 128], strides = [1, 1]} : vector<8x128xf32> to vector<1x128xf32>
      %36 = vector.extract_strided_slice %33 {offsets = [2, 0], sizes = [1, 128], strides = [1, 1]} : vector<8x128xf32> to vector<1x128xf32>
      %c0_26 = arith.constant 0 : index
      %c0_27 = arith.constant 0 : index
      %37 = vector.load %arg9[%c0_26, %c0_27] : memref<16x128xf32, #tpu.memory_space<vmem>>, vector<16x128xf32>
      %cst_28 = arith.constant 0.333333343 : f32
      %38 = vector.broadcast %cst_28 : f32 to vector<16x128xf32>
      %39 = arith.mulf %37, %38 : vector<16x128xf32>
      %40 = vector.broadcast %34 : vector<1x128xf32> to vector<16x128xf32>
      %41 = arith.addf %39, %40 : vector<16x128xf32>
      %42 = tpu.iota {dimensions = array<i32: 0>} : vector<16x128xi32>
      %c16_i32 = arith.constant 16 : i32
      %43 = vector.broadcast %c16_i32 : i32 to vector<16x128xi32>
      %44 = arith.cmpi slt, %42, %43 : vector<16x128xi32>
      %45 = arith.extui %44 : vector<16x128xi1> to vector<16x128xi32>
      %46 = arith.sitofp %45 : vector<16x128xi32> to vector<16x128xf32>
      %47 = arith.mulf %41, %46 : vector<16x128xf32>
      %cst_29 = arith.constant dense<0.000000e+00> : vector<128xf32>
      %48 = vector.multi_reduction <add>, %47, %cst_29 [0] : vector<16x128xf32> to vector<128xf32>
      %49 = vector.shape_cast %48 : vector<128xf32> to vector<1x128xf32>
      %cst_30 = arith.constant 6.250000e-02 : f32
      %50 = vector.broadcast %cst_30 : f32 to vector<1x128xf32>
      %51 = arith.mulf %49, %50 : vector<1x128xf32>
      %52 = vector.broadcast %51 : vector<1x128xf32> to vector<16x128xf32>
      %53 = arith.subf %41, %52 : vector<16x128xf32>
      %54 = arith.mulf %53, %46 : vector<16x128xf32>
      %55 = arith.mulf %54, %54 : vector<16x128xf32>
      %cst_31 = arith.constant dense<0.000000e+00> : vector<128xf32>
      %56 = vector.multi_reduction <add>, %55, %cst_31 [0] : vector<16x128xf32> to vector<128xf32>
      %57 = vector.shape_cast %56 : vector<128xf32> to vector<1x128xf32>
      %cst_32 = arith.constant 6.250000e-02 : f32
      %58 = vector.broadcast %cst_32 : f32 to vector<1x128xf32>
      %59 = arith.mulf %57, %58 : vector<1x128xf32>
      %60 = vector.broadcast %51 : vector<1x128xf32> to vector<16x128xf32>
      %61 = arith.subf %41, %60 : vector<16x128xf32>
      %cst_33 = arith.constant 9.99999974E-6 : f32
      %62 = vector.broadcast %cst_33 : f32 to vector<1x128xf32>
      %63 = arith.addf %59, %62 : vector<1x128xf32>
      %64 = math.rsqrt %63 : vector<1x128xf32>
      %65 = vector.broadcast %64 : vector<1x128xf32> to vector<16x128xf32>
      %66 = arith.mulf %61, %65 : vector<16x128xf32>
      %67 = vector.broadcast %35 : vector<1x128xf32> to vector<16x128xf32>
      %68 = arith.mulf %66, %67 : vector<16x128xf32>
      %69 = vector.broadcast %36 : vector<1x128xf32> to vector<16x128xf32>
      %70 = arith.addf %68, %69 : vector<16x128xf32>
      %c0_34 = arith.constant 0 : index
      %c0_35 = arith.constant 0 : index
      %71 = vector.load %arg8[%c0_34, %c0_35] : memref<16x128xf32, #tpu.memory_space<vmem>>, vector<16x128xf32>
      tpu.vector_store %arg8[%c0_34, %c0_35], %70 {strides = array<i32>} : memref<16x128xf32, #tpu.memory_space<vmem>>, vector<16x128xf32>,
    } else {
    }
    return
  }
  func.func @transform_0(%arg0: i32, %arg1: i32) -> (i32, i32, i32) {
    %c0_i32 = arith.constant 0 : i32
    %c0_i32_0 = arith.constant 0 : i32
    return %arg0, %arg1, %c0_i32 : i32, i32, i32
  }
  func.func @transform_1(%arg0: i32, %arg1: i32) -> (i32, i32, i32) {
    %c0_i32 = arith.constant 0 : i32
    %c0_i32_0 = arith.constant 0 : i32
    return %arg0, %arg1, %c0_i32 : i32, i32, i32
  }
  func.func @transform_2(%arg0: i32, %arg1: i32) -> (i32, i32, i32) {
    %c0_i32 = arith.constant 0 : i32
    %c0_i32_0 = arith.constant 0 : i32
    %c0_i32_1 = arith.constant 0 : i32
    return %arg0, %c0_i32, %c0_i32_0 : i32, i32, i32
  }
  func.func @transform_3(%arg0: i32, %arg1: i32) -> (i32, i32, i32) {
    %c0_i32 = arith.constant 0 : i32
    %c0_i32_0 = arith.constant 0 : i32
    return %arg0, %c0_i32, %arg1 : i32, i32, i32
  }
  func.func @transform_4(%arg0: i32, %arg1: i32) -> (i32, i32, i32) {
    %c0_i32 = arith.constant 0 : i32
    %c0_i32_0 = arith.constant 0 : i32
    return %arg0, %c0_i32, %arg1 : i32, i32, i32
  }
  func.func @transform_5(%arg0: i32, %arg1: i32) -> (i32, i32) {
    %c0_i32 = arith.constant 0 : i32
    %c0_i32_0 = arith.constant 0 : i32
    %c0_i32_1 = arith.constant 0 : i32
    return %c0_i32, %c0_i32_0 : i32, i32
  }
  func.func @transform_6(%arg0: i32, %arg1: i32) -> (i32, i32) {
    %c0_i32 = arith.constant 0 : i32
    %c0_i32_0 = arith.constant 0 : i32
    %c0_i32_1 = arith.constant 0 : i32
    return %c0_i32, %c0_i32_0 : i32, i32
  }
}

</mosaic_0001>

<bundles_post_ra>
// kernel: tpu_custom_call.1
= control target key start
LH: loop header
LB: loop body
LE: loop exit
PB: predicated region body
PF: predicated region fallthrough
CT: control target
= control target key end

     0   :  { %s1524_s0 = inlined_call_operand.hbm [shape: f32[3,128,128], index: 0, kind: input, shape index: {}]   ;;  %s1525_s1 = inlined_call_operand.hbm [shape: f32[3,128,128], index: 1, kind: input, shape index: {}]   ;;  %s1526_s2 = inlined_call_operand.hbm [shape: f32[3,128,128], index: 2, kind: input, shape index: {}]   ;;  %s1527_s3 = inlined_call_operand.hbm [shape: s32[3,1,128], index: 3, kind: input, shape index: {}]   ;;  %s1528_s4 = inlined_call_operand.vmem [shape: f32[3,1,128], index: 4, kind: input, shape index: {}]   ;;  %s1529_s5 = inlined_call_operand.hbm [shape: f32[8,128], index: 5, kind: input, shape index: {}]   ;;  %s1530_s6 = inlined_call_operand.hbm [shape: f32[16,128], index: 6, kind: output, shape index: {}]  }
   0x1   :  { %1534 = sst [smem:[#allocation21_spill]] %s1524_s0 }
   0x2   :  { %1535 = sst [smem:[#allocation22_spill]] %s1525_s1 }
   0x3   :  { %1536 = sst [smem:[#allocation23_spill]] %s1528_s4 }
   0x4   :  { %1537 = sst [smem:[#allocation24_spill]] %s1529_s5 }
   0x5   :  { %1538 = sst [smem:[#allocation25_spill]] %s1530_s6 }
   0x6   :  { %11 = vsyncpa [#allocation4], 0 }
   0x7   :  { %13 = vsyncpa [#allocation4 + $0x1], 0 }
   0x8   :  { %14 = vsyncpa [#allocation7], 0 }
   0x9   :  { %16 = vsyncpa [#allocation7 + $0x1], 0 }
   0xa   :  { %17 = vsyncpa [#allocation10], 0 }
   0xb   :  { %19 = vsyncpa [#allocation10 + $0x1], 0 }
   0xc   :  { %20 = vsyncpa [#allocation5], 0  ;;  %s1291_s21 = smov 0   ;;  %s1293_s22 = smov 0  }
   0xd   :  { %s1295_s23 = smov 0   ;;  %s1297_s24 = smov 0  }
   0xe   :  { %s1299_s25 = smov 0   ;;  %s1301_s26 = smov 0  }
   0xf LB: > { %1539 = sst [smem:[#allocation18_spill]] %s1235_s23  ;;  %s1320_s27 = sadd.s32 4294967295, %s1247_s26   ;;  %s1247_s26 = sphi %s1301_s26, %s26_s26   ;;  %s1243_s25 = sphi %s1299_s25, %s1559_s25   ;;  %s1239_s24 = sphi %s1297_s24, %s1558_s24   ;;  %s1235_s23 = sphi %s1295_s23, %s1554_s23   ;;  %s1231_s22 = sphi %s1293_s22, %s1557_s22   ;;  %s1227_s21 = sphi %s1291_s21, %s1556_s21  }
  0x10   : > { %s47_s28 = sadd.s32 1, %s1235_s23  ;;  %p54_p0 = scmp.ne.s32.totalorder %s1235_s23, %s1231_s22 }
  0x11   : > { %p55_p1 = scmp.eq.s32.totalorder %s1247_s26, 0  ;;  %p60_p2 = scmp.ne.s32.totalorder %s1231_s22, %s1227_s21 }
  0x12   : > { %p61_p3 = scmp.eq.s32.totalorder %s1320_s27, 0  ;;  %p844_p5 = scmp.ge.s32.totalorder %s1247_s26, 1 }
  0x13   : > { %p1328_p4 = por %p55_p1, %p54_p0  ;;  %p223_p7 = scmp.lt.s32.totalorder %s1247_s26, 4 }
  0x14   : > { %p1335_p6 = por %p61_p3, %p60_p2  ;;  %s1542_s5 = sld [smem:[#allocation24_spill]] }
  0x15   : > { %p1343_p8 = pnand %p844_p5, %p223_p7  ;;  %s1249_s11 = smov [#allocation11]  }
  0x16   : > { %s237_s12 = sshll.u32 %s1249_s11, 4  ;;  %p940_p10 = scmp.lt.s32.totalorder %s1247_s26, 3  ;;  %s238_s12 = int_to_ptr.vmem [resolvable:$true] %s237_s12 }
  0x17   : > { %p922_p9 = pneg %p1343_p8  ;;  %s38_s14 = sadd.s32 1, %s1243_s25 }
  0x18   : > { %p1354_p12 = pnand %p940_p10, %p1328_p4  ;;  %p40_p13 = scmp.ge.s32.totalorder %s38_s14, 3 }
  0x19   : > { %p923_p11 = pnand %p922_p9, %p61_p3  ;;  %s1360_s15 = sand.u32 1, %s1235_s23  }
  0x1a   : > { %s235_s9 = sshll.u32 %s1542_s5, 4  ;;  %s1363_s16 = sshll.u32 %s1243_s25, 7  ;;  %s236_s9 = int_to_ptr.hbm [resolvable:$true] %s235_s9 }
  0x1b   : > { %925 = dma.hbm_to_vmem [thread:$0]  (!%p923_p11), %s236_s9, 128, %s238_s12, [#allocation10]  }
  0x1c   : > { %s1561_s14 = smov (%p40_p13, %s38_s14), 0  ;;  %s847_s17 = sshll.u32 %s1360_s15, 7 }
  0x1d   : > { %1545 = sst [smem:[#allocation19_spill]] %s1561_s14  ;;  %s42_s18 = ssub.s32 %s1243_s25, %s1561_s14 }
  0x1e   : > { %p45_p0 = scmp.eq.s32.totalorder %s42_s18, 0  ;;  %s1532_s19 = sand.u32 1, %s1247_s26  }
  0x1f   : > { %s1547_s1 = sld [smem:[#allocation22_spill]]  ;;  %s276_s8 = scalar_lea.vmem [#allocation6], %s847_s17 }
  0x20   : > { %s1374_s20 = scalar_select %p45_p0, %s1235_s23, %s47_s28  }
  0x21   : > { %s286_s9 = sshll.u32 %s276_s8, 4  ;;  %s273_s12 = scalar_lea.sflag [#allocation7], %s1532_s19  ;;  %s287_s9 = int_to_ptr.vmem [resolvable:$true] %s286_s9 }
  0x22   : > { %1546 = sst [smem:[#allocation20_spill]] %s1374_s20  ;;  %s1250_s5 = smov 128  }
  0x23   : > { %s1251_s18 = smov 8   ;;  %s1548_s0 = sld [smem:[#allocation21_spill]] }
  0x24   : > { %s300_s23 = scalar_lea.vmem [#allocation8], %s847_s17 }
  0x25   : > { %s283_s7 = scalar_lea.hbm %s1547_s1, %s1363_s16  ;;  %s252_s1 = scalar_lea.vmem [#allocation3], %s847_s17 }
  0x26   : > { %s284_s11 = sshll.u32 %s283_s7, 4  ;;  %s262_s8 = sshll.u32 %s252_s1, 4  ;;  %s285_s11 = int_to_ptr.hbm [resolvable:$true] %s284_s11  ;;  %s263_s8 = int_to_ptr.vmem [resolvable:$true] %s262_s8 }
  0x27   : > { %932 = dma.hbm_to_vmem [thread:$0]  (!%p1354_p12), %s285_s11, 2048, %s287_s9, %s273_s12, %s1250_s5, %s1250_s5, %s1251_s18  }
  0x28   : > { %s249_s7 = scalar_lea.sflag [#allocation4], %s1360_s15  ;;  %s305_s9 = scalar_lea.hbm %s1526_s2, %s1363_s16 }
  0x29   : > { %s259_s21 = scalar_lea.hbm %s1548_s0, %s1363_s16  ;;  %s306_s11 = sshll.u32 %s305_s9, 4  ;;  %s307_s11 = int_to_ptr.hbm [resolvable:$true] %s306_s11 }
  0x2a   : > { %s260_s29 = sshll.u32 %s259_s21, 4  ;;  %s308_s14 = sshll.u32 %s300_s23, 4  ;;  %s261_s29 = int_to_ptr.hbm [resolvable:$true] %s260_s29  ;;  %s309_s14 = int_to_ptr.vmem [resolvable:$true] %s308_s14 }
  0x2b   : > { %929 = dma.hbm_to_vmem [thread:$0]  (!%p1354_p12), %s261_s29, 2048, %s263_s8, %s249_s7, %s1250_s5, %s1250_s5, %s1251_s18  }
  0x2c   : > { %935 = dma.hbm_to_vmem [thread:$0]  (!%p1354_p12), %s307_s11, 2048, %s309_s14, %s273_s12, %s1250_s5, %s1250_s5, %s1251_s18  }
  0x2d   : > { %s325_s21 = scalar_lea.hbm %s1527_s3, %s1243_s25  ;;  %s321_s0 = scalar_lea.vmem [#allocation9], %s1360_s15 }
  0x2e   : > { %s329_s6 = sshll.u32 %s321_s0, 4  ;;  %s327_s4 = sshll.u32 %s325_s21, 4  ;;  %s330_s6 = int_to_ptr.vmem [resolvable:$true] %s329_s6  ;;  %s328_s4 = int_to_ptr.hbm [resolvable:$true] %s327_s4 }
  0x2f   : > { %s1549_s29 = sand.u32 1, %s1247_s26   ;;  %347 = sbr.rel (%p1343_p8) target bundleno = 534 (0x216), region = 44 }
  0x30   : > { %s319_s8 = scalar_lea.sflag [#allocation10], %s1549_s29  ;;  %s1409_s23 = sand.u32 (!%p1343_p8), 1, %s1231_s22  }
  0x31   : > { %938 = dma.hbm_to_vmem [thread:$0]  (!%p1354_p12), %s328_s4, 16, %s330_s6, %s319_s8  }
  0x32   : > { %s857_s5 = sshll.u32 (!%p1343_p8), %s1409_s23, 7  ;;  %s350_s16 = scalar_lea.sflag (!%p1343_p8), [#allocation4], %s1409_s23 }
  0x33   : > { %s1413_s15 = scalar_lea.vmem (!%p1343_p8), [#allocation3], %s857_s5 }
  0x34   : > { %1206 = dma.done.wait (%p1335_p6), %s350_s16, 2048  }
  0x35   : > { %1208 = vsyncadd (%p1335_p6), %s350_s16, 4294965248  ;;  %s359_s0 = sand.u32 1, %s1320_s27   ;;  %s1420_s6 = scalar_lea.vmem [#allocation6], %s857_s5 }
  0x36   : > { %s360_s4 = scalar_lea.sflag [#allocation7], %s359_s0 }
  0x37   : > { %1210 = dma.done.wait (%p1335_p6), %s360_s4, 4096  }
  0x38   : > { %1212 = vsyncadd (%p1335_p6), %s360_s4, 4294963200  ;;  %s1426_s10 = scalar_lea.vmem [#allocation8], %s857_s5  ;;  %s380_s13 = scalar_lea.sflag [#allocation10], %s359_s0 }
  0x39   : > { %s382_s17 = scalar_lea.vmem [#allocation9], %s1409_s23 }
  0x3a   : > { %1214 = dma.done.wait (%p1335_p6), %s380_s13, 16  }
  0x3b   : > { %1216 = vsyncadd (%p1335_p6), %s380_s13, 4294967280 }
  0x3c   : > { %1218 = dma.done.wait (%p61_p3), [#allocation10], 128  }
  0x3d   : > { %1220 = vsyncadd (%p61_p3), [#allocation10], 4294967168  ;;  %p434_p1 = scmp.lt.s32.totalorder %s1239_s24, 2  ;;  %p440_p2 = scmp.eq.s32.totalorder %s1239_s24, 0 }
  0x3e   : > { %s1550_s18 = sld [smem:[#allocation23_spill]]  ;;  %v1252_v0 = vmov (%p440_p2), 0.0  }
  0x3f   : > { %s1440_s19 = scalar_select %p434_p1, %s1239_s24, 2  ;;  %446 = vst [vmem:[#allocation2] sm:$0xff] (%p440_p2), %v1252_v0 }
  0x40   : > { %445 = sbr.rel (!%p440_p2) target bundleno = 69 (0x45), region = 68  ;;  %447 = vst [vmem:[#allocation2 + $0x8] sm:$0xff] (%p440_p2), %v1252_v0 }
  0x44   : > { %s439_s7 = scalar_lea.vmem %s1550_s18, %s1440_s19 }
  0x45 PF: > { %v511_v1 = vld [vmem:[%s1426_s10 + $0x78] sm:$0xff]  ;;  %v510_v2 = vld [vmem:[%s1426_s10 + $0x70] sm:$0xff]  ;;  %v509_v3 = vld [vmem:[%s1426_s10 + $0x68] sm:$0xff]  ;;  %p619_p3 = scmp.eq.s32.totalorder %s1239_s24, 2 }
  0x46   : > { %875 = vmatpush.msra.mxu3 %v511_v1  ;;  %874 = vmatpush.msra.mxu2 %v511_v1  ;;  %v508_v4 = vld [vmem:[%s1426_s10 + $0x60] sm:$0xff]  ;;  %v507_v5 = vld [vmem:[%s1426_s10 + $0x58] sm:$0xff]  ;;  %v506_v6 = vld [vmem:[%s1426_s10 + $0x50] sm:$0xff] }
  0x47   : > { %512 = vmatpush.msra.mxu0 %v511_v1  ;;  %v505_v7 = vld [vmem:[%s1426_s10 + $0x48] sm:$0xff]  ;;  %v504_v8 = vld [vmem:[%s1426_s10 + $0x40] sm:$0xff]  ;;  %v503_v9 = vld [vmem:[%s1426_s10 + $0x38] sm:$0xff] }
  0x48   : > { %877 = vmatpush.msra.mxu3 %v510_v2  ;;  %876 = vmatpush.msra.mxu2 %v510_v2  ;;  %v502_v10 = vld [vmem:[%s1426_s10 + $0x30] sm:$0xff]  ;;  %v501_v11 = vld [vmem:[%s1426_s10 + $0x28] sm:$0xff]  ;;  %v500_v12 = vld [vmem:[%s1426_s10 + $0x20] sm:$0xff] }
  0x49   : > { %513 = vmatpush.msra.mxu0 %v510_v2  ;;  %v499_v13 = vld [vmem:[%s1426_s10 + $0x18] sm:$0xff]  ;;  %v498_v14 = vld [vmem:[%s1426_s10 + $0x10] sm:$0xff]  ;;  %v457_v15 = vld [vmem:[%s1413_s15 + $0x48] sm:$0xff] }
  0x4a   : > { %879 = vmatpush.msra.mxu3 %v509_v3  ;;  %878 = vmatpush.msra.mxu2 %v509_v3  ;;  %v473_v16 = vld [vmem:[%s1420_s6 + $0x48] sm:$0xff]  ;;  %v452_v17 = vld [vmem:[%s1413_s15 + $0x20] sm:$0xff]  ;;  %v458_v23 = vld [vmem:[%s1413_s15 + $0x50] sm:$0xff] }
  0x4b   : > { %514 = vmatpush.msra.mxu0 %v509_v3  ;;  %v468_v18 = vld [vmem:[%s1420_s6 + $0x20] sm:$0xff]  ;;  %v497_v19 = vld [vmem:[%s1426_s10 + $0x8] sm:$0xff]  ;;  %v489_v21 = vmul.f32 %v473_v16, %v457_v15  ;;  %v474_v24 = vld [vmem:[%s1420_s6 + $0x50] sm:$0xff]  ;;  %v577_v16 = vlaneseq }
  0x4c   : > { %881 = vmatpush.msra.mxu3 %v508_v4  ;;  %880 = vmatpush.msra.mxu2 %v508_v4  ;;  %v496_v20 = vld [vmem:[%s1426_s10] sm:$0xff]  ;;  %v484_v22 = vmul.f32 %v468_v18, %v452_v17  ;;  %v453_v25 = vld [vmem:[%s1413_s15 + $0x28] sm:$0xff]  ;;  %v490_v27 = vmul.f32 %v474_v24, %v458_v23  ;;  %v459_v29 = vld [vmem:[%s1413_s15 + $0x58] sm:$0xff] }
  0x4d   : > { %515 = vmatpush.msra.mxu0 %v508_v4  ;;  %v469_v26 = vld [vmem:[%s1420_s6 + $0x28] sm:$0xff]  ;;  %v475_v30 = vld [vmem:[%s1420_s6 + $0x58] sm:$0xff]  ;;  %v454_v31 = vld [vmem:[%s1413_s15 + $0x30] sm:$0xff]  ;;  %v578_v18 = vshrl.u32 %v577_v16, 7 }
  0x4e   : > { %883 = vmatpush.msra.mxu3 %v507_v5  ;;  %882 = vmatpush.msra.mxu2 %v507_v5  ;;  %v485_v28 = vmul.f32 %v469_v26, %v453_v25  ;;  %v470_v32 = vld [vmem:[%s1420_s6 + $0x30] sm:$0xff]  ;;  %v491_v33 = vmul.f32 %v475_v30, %v459_v29  ;;  %v460_v35 = vld [vmem:[%s1413_s15 + $0x60] sm:$0xff]  ;;  %v455_v40 = vld [vmem:[%s1413_s15 + $0x38] sm:$0xff] }
  0x4f   : > { %516 = vmatpush.msra.mxu0 %v507_v5  ;;  %v486_v34 = vmul.f32 %v470_v32, %v454_v31  ;;  %v448_v36 = vld [vmem:[%s1413_s15] sm:$0xff]  ;;  %v471_v41 = vld [vmem:[%s1420_s6 + $0x38] sm:$0xff]  ;;  %v449_v44 = vld [vmem:[%s1413_s15 + $0x8] sm:$0xff] }
  0x50   : > { %885 = vmatpush.msra.mxu3 %v506_v6  ;;  %884 = vmatpush.msra.mxu2 %v506_v6  ;;  %v464_v37 = vld [vmem:[%s1420_s6] sm:$0xff]  ;;  %v487_v43 = vmul.f32 %v471_v41, %v455_v40  ;;  %v465_v45 = vld [vmem:[%s1420_s6 + $0x8] sm:$0xff]  ;;  %v450_v53 = vld [vmem:[%s1413_s15 + $0x10] sm:$0xff] }
  0x51   : > { %517 = vmatpush.msra.mxu0 %v506_v6  ;;  %v476_v38 = vld [vmem:[%s1420_s6 + $0x60] sm:$0xff]  ;;  %v480_v39 = vmul.f32 %v464_v37, %v448_v36  ;;  %v481_v46 = vmul.f32 %v465_v45, %v449_v44  ;;  %v461_v47 = vld [vmem:[%s1413_s15 + $0x68] sm:$0xff]  ;;  %v466_v54 = vld [vmem:[%s1420_s6 + $0x10] sm:$0xff] }
  0x52   : > { %887 = vmatpush.msra.mxu3 %v505_v7  ;;  %886 = vmatpush.msra.mxu2 %v505_v7  ;;  %v492_v42 = vmul.f32 %v476_v38, %v460_v35  ;;  %v477_v48 = vld [vmem:[%s1420_s6 + $0x68] sm:$0xff]  ;;  %v456_v49 = vld [vmem:[%s1413_s15 + $0x40] sm:$0xff]  ;;  %v482_v55 = vmul.f32 %v466_v54, %v450_v53  ;;  %v462_v56 = vld [vmem:[%s1413_s15 + $0x70] sm:$0xff] }
  0x53   : > { %518 = vmatpush.msra.mxu0 %v505_v7  ;;  %v472_v50 = vld [vmem:[%s1420_s6 + $0x40] sm:$0xff]  ;;  %v493_v51 = vmul.f32 %v477_v48, %v461_v47  ;;  %v478_v57 = vld [vmem:[%s1420_s6 + $0x70] sm:$0xff]  ;;  %v451_v59 = vld [vmem:[%s1413_s15 + $0x18] sm:$0xff] }
  0x54   : > { %889 = vmatpush.msra.mxu3 %v504_v8  ;;  %888 = vmatpush.msra.mxu2 %v504_v8  ;;  %v488_v52 = vmul.f32 %v472_v50, %v456_v49  ;;  %v494_v58 = vmul.f32 %v478_v57, %v462_v56  ;;  %v467_v60 = vld [vmem:[%s1420_s6 + $0x18] sm:$0xff] }
  0x55   : > { %519 = vmatpush.msra.mxu0 %v504_v8  ;;  %v483_v61 = vmul.f32 %v467_v60, %v451_v59  ;;  %v463_v62 = vld [vmem:[%s1413_s15 + $0x78] sm:$0xff] }
  0x56   : > { %891 = vmatpush.msra.mxu3 %v503_v9  ;;  %890 = vmatpush.msra.mxu2 %v503_v9  ;;  %v479_v63 = vld [vmem:[%s1420_s6 + $0x78] sm:$0xff] }
  0x57   : > { %520 = vmatpush.msra.mxu0 %v503_v9  ;;  %v495_v0 = vmul.f32 %v479_v63, %v463_v62  ;;  %v591_v25 = vld [vmem:[#allocation2 + $0x8] sm:$0xff] }
  0x58   : > { %893 = vmatpush.msra.mxu3 %v502_v10  ;;  %892 = vmatpush.msra.mxu2 %v502_v10 }
  0x59   : > { %521 = vmatpush.msra.mxu0 %v502_v10 }
  0x5a   : > { %895 = vmatpush.msra.mxu3 %v501_v11  ;;  %894 = vmatpush.msra.mxu2 %v501_v11 }
  0x5b   : > { %522 = vmatpush.msra.mxu0 %v501_v11 }
  0x5c   : > { %897 = vmatpush.msra.mxu3 %v500_v12  ;;  %896 = vmatpush.msra.mxu2 %v500_v12 }
  0x5d   : > { %523 = vmatpush.msra.mxu0 %v500_v12 }
  0x5e   : > { %899 = vmatpush.msra.mxu3 %v499_v13  ;;  %898 = vmatpush.msra.mxu2 %v499_v13 }
  0x5f   : > { %524 = vmatpush.msra.mxu0 %v499_v13 }
  0x60   : > { %901 = vmatpush.msra.mxu3 %v498_v14  ;;  %900 = vmatpush.msra.mxu2 %v498_v14 }
  0x61   : > { %525 = vmatpush.msra.mxu0 %v498_v14 }
  0x62   : > { %903 = vmatpush.msra.mxu3 %v497_v19  ;;  %902 = vmatpush.msra.mxu2 %v497_v19 }
  0x63   : > { %526 = vmatpush.msra.mxu0 %v497_v19  ;;  %v999_v19 = vld [vmem:[%s382_s17] ss:$0 sm:$0xff] }
  0x64   : > { %905 = vmatpush.msra.mxu3 %v496_v20  ;;  %904 = vmatpush.msra.mxu2 %v496_v20  ;;  %vm582_vm0 = vcmp.eq.s32.totalorder %v578_v18, %v999_v19 }
  0x65   : > { %555 = vmatmul.f32.vlgmr.msra.gmra.mxu3 %v489_v21  ;;  %540 = vmatmul.f32.vlgmr.msra.gmra.mxu2 %v484_v22  ;;  %v579_v21 = vadd.s32 8, %v578_v18  ;;  %v590_v22 = vld [vmem:[#allocation2] sm:$0xff] }
  0x66   : > { %527 = vmatpush.msra.mxu0 %v496_v20  ;;  %v1000_v20 = vld [vmem:[%s439_s7] ss:$0 sm:$0xff] }
  0x67   : > { %528 = vmatmul.f32.vlgmr.msra.gmra.mxu0 %v480_v39  ;;  %vm583_vm1 = vcmp.eq.s32.totalorder %v579_v21, %v999_v19 }
  0x6d   : > { %558 = vmatmul.f32.gmra.mxu3 %v490_v27  ;;  %543 = vmatmul.f32.gmra.mxu2 %v485_v28  ;;  %v624_v28 = vld [vmem:[#allocation11] sm:$0xff] (%p619_p3) }
  0x6e   : > { %v675_v63 = vperm.slane (%p619_p3), %v624_v28, 1 }
  0x6f   : > { %531 = vmatmul.f32.gmra.mxu0 %v481_v46 }
  0x75   : > { %561 = vmatmul.f32.gmra.mxu3 %v491_v33  ;;  %546 = vmatmul.f32.gmra.mxu2 %v486_v34  ;;  %v629_v33 = vperm.slane (%p619_p3), %v624_v28, 0 }
  0x77   : > { %534 = vmatmul.f32.gmra.mxu0 %v482_v55 }
  0x7d   : > { %564 = vmatmul.f32.gmra.mxu3 %v492_v42  ;;  %549 = vmatmul.f32.gmra.mxu2 %v487_v43 }
  0x7f   : > { %537 = vmatmul.f32.gmra.mxu0 %v483_v61 }
  0x85   : > { %567 = vmatmul.f32.gmra.mxu3 %v493_v51  ;;  %552 = vmatmul.f32.gmra.mxu2 %v488_v52 }
  0x8d   : > { %570 = vmatmul.f32.gmra.mxu3 %v494_v58 }
  0x95   : > { %573 = vmatmul.f32.gmra.mxu3 %v495_v0 }
  0xe4   : > { %v529_v8 = vpop.f32.mrf.mxu0 }
  0xe8   : > { %v556_v1 = vpop.f32.mrf.mxu3  ;;  %v541_v4 = vpop.f32.mrf.mxu2 }
  0xec   : > { %v532_v13 = vpop.f32.mrf.mxu0 }
  0xf0   : > { %v559_v2 = vpop.f32.mrf.mxu3  ;;  %v544_v6 = vpop.f32.mrf.mxu2 }
  0xf4   : > { %v535_v15 = vpop.f32.mrf.mxu0 }
  0xf8   : > { %v562_v3 = vpop.f32.mrf.mxu3  ;;  %v547_v10 = vpop.f32.mrf.mxu2 }
  0xfc   : > { %v538_v17 = vpop.f32.mrf.mxu0 }
 0x100   : > { %v565_v5 = vpop.f32.mrf.mxu3  ;;  %v550_v12 = vpop.f32.mrf.mxu2 }
 0x108   : > { %v568_v7 = vpop.f32.mrf.mxu3  ;;  %v553_v14 = vpop.f32.mrf.mxu2 }
 0x110   : > { %v571_v9 = vpop.f32.mrf.mxu3 }
 0x118   : > { %v574_v11 = vpop.f32.mrf.mxu3 }
 0x119   : > { %592 = vmatpush.msra.mxu1 %v574_v11 }
 0x11b   : > { %593 = vmatpush.msra.mxu1 %v571_v9 }
 0x11d   : > { %594 = vmatpush.msra.mxu1 %v568_v7 }
 0x11f   : > { %595 = vmatpush.msra.mxu1 %v565_v5 }
 0x121   : > { %596 = vmatpush.msra.mxu1 %v562_v3 }
 0x123   : > { %597 = vmatpush.msra.mxu1 %v559_v2  ;;  %v678_v2 = vperm.slane (%p619_p3), %v624_v28, 2 }
 0x125   : > { %598 = vmatpush.msra.mxu1 %v556_v1 }
 0x127   : > { %599 = vmatpush.msra.mxu1 %v553_v14 }
 0x129   : > { %600 = vmatpush.msra.mxu1 %v550_v12 }
 0x12b   : > { %601 = vmatpush.msra.mxu1 %v547_v10 }
 0x12d   : > { %602 = vmatpush.msra.mxu1 %v544_v6 }
 0x12f   : > { %603 = vmatpush.msra.mxu1 %v541_v4 }
 0x131   : > { %604 = vmatpush.msra.mxu1 %v538_v17 }
 0x133   : > { %605 = vmatpush.msra.mxu1 %v535_v15 }
 0x135   : > { %606 = vmatpush.msra.mxu1 %v532_v13 }
 0x137   : > { %607 = vmatpush.msra.mxu1 %v529_v8 }
 0x138   : > { %862 = vmatmul.msk.f32.vlgmr.msra.gmra.mxu1 %vm582_vm0, %v1000_v20 }
 0x140   : > { %863 = vmatmul.msk.f32.gmra.mxu1 %vm583_vm1, %v1000_v20 }
 0x1b5   : > { %v609_v23 = vpop.f32.mrf.mxu1 }
 0x1b6   : > { %v615_v24 = vadd.f32 %v609_v23, %v590_v22 }
 0x1b8   : > { %617 = vst [vmem:[#allocation2] sm:$0xff] %v615_v24 }
 0x1bc   : > { %623 = sbr.rel (!%p619_p3) target bundleno = 524 (0x20c), region = 72 }
 0x1bd   : > { %v612_v26 = vpop.f32.mrf.mxu1 }
 0x1be   : > { %v616_v27 = vadd.f32 %v612_v26, %v591_v25 }
 0x1bf   : > { %v625_v29 = vld [vmem:[#allocation2] sm:$0xff] (%p619_p3) }
 0x1c0   : > { %618 = vst [vmem:[#allocation2 + $0x8] sm:$0xff] %v616_v27  ;;  %v627_v31 = vmul.f32 (%p619_p3), 0.33333334, %v625_v29 }
 0x1c2   : > { %v630_v34 = vadd.f32 %v629_v33, %v627_v31 }
 0x1c7   : > { %v626_v30 = vld [vmem:[#allocation2 + $0x8] sm:$0xff] }
 0x1c8   : > { %v628_v32 = vmul.f32 0.33333334, %v626_v30 }
 0x1ca   : > { %v631_v35 = vadd.f32 %v629_v33, %v628_v32 }
 0x1cc   : > { %v640_v36 = vadd.f32 %v631_v35, %v630_v34 }
 0x1ce   : > { %v641_v37 = vrot.slane %v640_v36, 4 }
 0x1d0   : > { %v642_v38 = vadd.f32 %v641_v37, %v640_v36 }
 0x1d2   : > { %v643_v39 = vrot.slane %v642_v38, 2 }
 0x1d4   : > { %v644_v40 = vadd.f32 %v643_v39, %v642_v38 }
 0x1d6   : > { %v645_v41 = vrot.slane %v644_v40, 1 }
 0x1d8   : > { %v646_v42 = vadd.f32 %v645_v41, %v644_v40 }
 0x1da   : > { %v647_v43 = vmul.f32 0.0625, %v646_v42 }
 0x1dc   : > { %v648_v44 = vsub.f32 %v630_v34, %v647_v43  ;;  %v649_v45 = vsub.f32 %v631_v35, %v647_v43 }
 0x1de   : > { %v652_v46 = vmul.f32 %v648_v44, %v648_v44  ;;  %v653_v47 = vmul.f32 %v649_v45, %v649_v45 }
 0x1e0   : > { %v654_v48 = vadd.f32 %v653_v47, %v652_v46 }
 0x1e2   : > { %v655_v49 = vrot.slane %v654_v48, 4 }
 0x1e4   : > { %v656_v50 = vadd.f32 %v655_v49, %v654_v48 }
 0x1e6   : > { %v657_v51 = vrot.slane %v656_v50, 2 }
 0x1e8   : > { %v658_v52 = vadd.f32 %v657_v51, %v656_v50 }
 0x1ea   : > { %v659_v53 = vrot.slane %v658_v52, 1 }
 0x1ec   : > { %v660_v54 = vadd.f32 %v659_v53, %v658_v52 }
 0x1ee   : > { %v661_v55 = vmul.f32 0.0625, %v660_v54 }
 0x1f0   : > { %v662_v56 = vadd.f32 1e-05, %v661_v55 }
 0x1f2   : > { %1001 = vrsqrt.f32 %v662_v56  ;;  %vm669_vm2 = vweird.f32 %v662_v56 }
 0x1f8   : > { %v1002_v57 = vpop.eup %1001 }
 0x1f9   : > { %v664_v58 = vmul.f32 %v1002_v57, %v662_v56  ;;  %vm670_vm3 = vweird.f32 %v1002_v57 }
 0x1fa   : > { %vm671_vm4 = vmor %vm669_vm2, %vm670_vm3 }
 0x1fb   : > { %v665_v59 = vmul.f32 %v1002_v57, %v664_v58 }
 0x1fd   : > { %v666_v60 = vmul.f32 0.5, %v665_v59 }
 0x1ff   : > { %v667_v61 = vsub.f32 1.5, %v666_v60 }
 0x201   : > { %v668_v62 = vmul.f32 %v1002_v57, %v667_v61 }
 0x203   : > { %v672_v0 = vsel %vm671_vm4, %v1002_v57, %v668_v62 }
 0x204   : > { %v673_v1 = vmul.f32 %v672_v0, %v648_v44  ;;  %v674_v3 = vmul.f32 %v672_v0, %v649_v45 }
 0x206   : > { %v676_v4 = vmul.f32 %v675_v63, %v673_v1  ;;  %v677_v5 = vmul.f32 %v675_v63, %v674_v3 }
 0x208   : > { %v679_v6 = vadd.f32 %v678_v2, %v676_v4  ;;  %v680_v7 = vadd.f32 %v678_v2, %v677_v5 }
 0x20a   : > { %681 = vst [vmem:[#allocation12] sm:$0xff] %v679_v6 }
 0x20b   : > { %682 = vst [vmem:[#allocation12 + $0x8] sm:$0xff] %v680_v7 }
 0x20c PF: > { %p942_p4 = scmp.eq.s32.totalorder %s1320_s27, 2  ;;  %s1552_s28 = sld [smem:[#allocation25_spill]] }
 0x20d   : > { %s1253_s21 = smov [#allocation12]   ;;  %s1254_s8 = smov 128  }
 0x20e   : > { %s688_s29 = sshll.u32 %s1253_s21, 4  ;;  %s1255_s23 = smov 8   ;;  %s689_s29 = int_to_ptr.vmem [resolvable:$true] %s688_s29 }
 0x212   : > { %s690_s1 = sshll.u32 %s1552_s28, 4  ;;  %s691_s1 = int_to_ptr.hbm [resolvable:$true] %s690_s1 }
 0x213   : > { %919 = dma.vmem_to_hbm [thread:$0]  (%p942_p4), %s689_s29, 256, %s691_s1, [#allocation5], %s1254_s8, %s1254_s8, %s1255_s23  }
 0x214   : > { %1222 = dma.done.wait (%p942_p4), [#allocation5], 256  }
 0x215   : > { %1224 = vsyncadd (%p942_p4), [#allocation5], 4294967040 }
 0x216 PF: > { %s26_s26 = sadd.s32 1, %s1247_s26   ;;  %s1553_s5 = sld [smem:[#allocation18_spill]] }
 0x217   : > { %p23_p5 = scmp.ge.s32.totalorder %s26_s26, 5   ;;  %s1554_s23 = sld [smem:[#allocation20_spill]] }
 0x218   : > { %s1555_s27 = sld [smem:[#allocation19_spill]]  ;;  %s1556_s21 = smov %s1231_s22 }
 0x219   : > { %s1558_s24 = smov %s1243_s25 }
 0x21a   :  { %25 = sbr.rel (!%p23_p5) target bundleno = 15 (0xf), region = 133 }
 0x21c   : > { %s1557_s22 = smov %s1553_s5 }
 0x21e   : > { %s1559_s25 = smov %s1555_s27 }
 0x21f   :  { %707 = vsyncpa [#allocation4], 1 }
 0x220   :  { %709 = vsyncpa [#allocation4 + $0x1], 1 }
 0x221   :  { %710 = vsyncpa [#allocation7], 1 }
 0x222   :  { %712 = vsyncpa [#allocation7 + $0x1], 1 }
 0x223   :  { %713 = vsyncpa [#allocation10], 1 }
 0x224   :  { %715 = vsyncpa [#allocation10 + $0x1], 1 }
 0x225   :  { %716 = vsyncpa [#allocation5], 1 }
 0x226   :  { %718 = vsyncpa [#allocation5 + $0x1], 1 }

</bundles_post_ra>
